<compile_context>
chip_gen: v5e
topology: v5e:2x2
jax: 0.10.0
libtpu: 0.0.40
codegen_flags: <defaults>
</compile_context>

<pallas_src>
import math

import jax
import jax.numpy as jnp
from jax import lax
from jax.experimental import pallas as pl
from jax.experimental.pallas import tpu as pltpu

# Problem dimensions (small, consistent with the module's forward pass).
BATCH = 8
X1_DIM = 32
X2_DIM = 48
QUERY_DIM = 64
KEY_DIM = 64       # must equal QUERY_DIM for q @ k^T
VALUE_DIM = 32
SCALE = 1.0 / math.sqrt(QUERY_DIM)

# Fused-weight column layout: every slice starts on a 128-lane tile boundary.
PACKED_IN = X1_DIM + X2_DIM          # 80
Q_OFF = 0                            # lanes [  0,  64)
K_OFF = 128                          # lanes [128, 192)
V_OFF = 256                          # lanes [256, 288)
W_WIDTH = V_OFF + VALUE_DIM          # 288


def attention_kernel(x_ref, w_ref, o_ref):
    # Single fused QKV projection on the MXU: (B, 80) @ (80, 288) -> (B, 288).
    # The 1/sqrt(d) score scale is pre-folded into the Q columns of w.
    qkv = jnp.dot(x_ref[...], w_ref[...], preferred_element_type=jnp.float32)

    # Tile-aligned static slices (lane offsets 0 / 128 / 256 -> no lane rotate).
    q = qkv[:, Q_OFF:Q_OFF + QUERY_DIM]        # (B, 64), already scaled
    k = qkv[:, K_OFF:K_OFF + KEY_DIM]          # (B, 64)
    v = qkv[:, V_OFF:V_OFF + VALUE_DIM]        # (B, 32)

    # Scores (B, B): contract on axis 1 of both operands so the MXU consumes
    # k "transposed" without an explicit XLU transpose / materialized copy.
    s = lax.dot_general(
        q, k,
        dimension_numbers=(((1,), (1,)), ((), ())),
        preferred_element_type=jnp.float32,
    )

    # Numerically-stable softmax over the last axis, kept in f32.
    m = jnp.max(s, axis=-1, keepdims=True)
    p = jnp.exp(s - m)
    denom = jnp.sum(p, axis=-1, keepdims=True)
    # Exact reciprocal: approx=True's ~2^-12 rel error risks the 1e-5 check.
    attn = p * pl.reciprocal(denom, approx=False)

    # Output: (B, VALUE_DIM)
    o_ref[...] = jnp.dot(attn, v, preferred_element_type=jnp.float32).astype(
        o_ref.dtype
    )


def attention_forward_packed(x_packed, w_fused):
    """Preferred entry point: x_packed = [x1 | x2] of shape (B, 80)."""
    b = x_packed.shape[0]
    vmem = lambda: pl.BlockSpec(memory_space=pltpu.MemorySpace.VMEM)

    flops = (
        2 * b * PACKED_IN * W_WIDTH      # fused QKV projection
        + 2 * b * b * QUERY_DIM          # q @ k^T
        + 2 * b * b * VALUE_DIM          # attn @ v
    )
    bytes_accessed = 4 * (x_packed.size + w_fused.size + b * VALUE_DIM)
    cost = pl.CostEstimate(
        flops=flops, transcendentals=b * b, bytes_accessed=bytes_accessed
    )

    return pl.pallas_call(
        attention_kernel,
        out_shape=jax.ShapeDtypeStruct((b, VALUE_DIM), jnp.float32),
        in_specs=[vmem(), vmem()],
        out_specs=vmem(),
        cost_estimate=cost,
    )(x_packed, w_fused)


def attention_forward(x1, x2, w_fused):
    """Matches AttentionModel.forward(x1, x2). Packs the activations per call.

    If the caller can emit [x1 | x2] contiguously upstream, use
    attention_forward_packed directly and skip this (tiny) concat.
    """
    return attention_forward_packed(jnp.concatenate([x1, x2], axis=-1), w_fused)


def build_fused_weight(wq_t, wk_t, wv_t):
    """One-time parameter prep: block-diagonal [Wq*scale | Wk | Wv] slab.

    Q/K/V column blocks start at lanes 0 / 128 / 256 so the in-kernel slices
    are 128-lane-tile aligned. The 1/sqrt(query_dim) scale is folded into Wq.
    """
    w = jnp.zeros((PACKED_IN, W_WIDTH), jnp.float32)
    w = w.at[:X1_DIM, Q_OFF:Q_OFF + QUERY_DIM].set(wq_t * SCALE)
    w = w.at[X1_DIM:, K_OFF:K_OFF + KEY_DIM].set(wk_t)
    w = w.at[X1_DIM:, V_OFF:V_OFF + VALUE_DIM].set(wv_t)
    return w


def reference_forward(x1, x2, wq_t, wk_t, wv_t):
    q = x1 @ wq_t
    k = x2 @ wk_t
    v = x2 @ wv_t
    s = (q @ k.T) / math.sqrt(QUERY_DIM)
    attn = jax.nn.softmax(s, axis=-1)
    return attn @ v


if __name__ == "__main__":
    key = jax.random.PRNGKey(0)
    k_x, k_wq, k_wk, k_wv = jax.random.split(key, 4)

    # Packed activation emitted contiguously "upstream" (preferred path); the
    # per-tensor views x1/x2 are slices of it, used for the reference check
    # and for exercising the forward(x1, x2)-shaped wrapper.
    x_packed = jax.random.normal(k_x, (BATCH, PACKED_IN), dtype=jnp.float32)
    x1 = x_packed[:, :X1_DIM]
    x2 = x_packed[:, X1_DIM:]

    # Deterministic parameter init (Kaiming-uniform-ish scaling like nn.Linear),
    # returned pre-transposed as (in_dim, out_dim).
    def init_linear(rng, in_dim, out_dim):
        bound = 1.0 / math.sqrt(in_dim)
        w = jax.random.uniform(
            rng, (out_dim, in_dim), minval=-bound, maxval=bound, dtype=jnp.float32
        )
        return w.T

    wq_t = init_linear(k_wq, X1_DIM, QUERY_DIM)    # (32, 64)
    wk_t = init_linear(k_wk, X2_DIM, KEY_DIM)      # (48, 64)
    wv_t = init_linear(k_wv, X2_DIM, VALUE_DIM)    # (48, 32)

    # One-time weight fusion (parameter setup, not per-call work).
    w_fused = build_fused_weight(wq_t, wk_t, wv_t)  # (80, 288)

    out_packed = jax.block_until_ready(attention_forward_packed(x_packed, w_fused))
    out_api = jax.block_until_ready(attention_forward(x1, x2, w_fused))

    ref = reference_forward(x1, x2, wq_t, wk_t, wv_t)
    assert out_packed.shape == (BATCH, VALUE_DIM)
    assert jnp.allclose(out_packed, ref, atol=1e-5, rtol=1e-5)
    assert jnp.allclose(out_api, ref, atol=1e-5, rtol=1e-5)

    print("KERNEL_OK")
</pallas_src>

<mosaic_0001>
module attributes {stable_mosaic.version = 11 : i64} {
  func.func @attention_kernel(%arg0: memref<8x80xf32, #tpu.memory_space<vmem>>, %arg1: memref<80x288xf32, #tpu.memory_space<vmem>>, %arg2: memref<8x32xf32, #tpu.memory_space<vmem>>) attributes {dimension_semantics = [], scalar_prefetch = 0 : i64, scratch_operands = 0 : i64, tpu.core_type = #tpu.core_type<tc>} {
    %c0 = arith.constant 0 : index
    %c0_0 = arith.constant 0 : index
    %0 = vector.load %arg0[%c0, %c0_0] : memref<8x80xf32, #tpu.memory_space<vmem>>, vector<8x80xf32>
    %c0_1 = arith.constant 0 : index
    %c0_2 = arith.constant 0 : index
    %1 = vector.load %arg1[%c0_1, %c0_2] : memref<80x288xf32, #tpu.memory_space<vmem>>, vector<80x288xf32>
    %cst = arith.constant dense<0.000000e+00> : vector<8x288xf32>
    %2 = tpu.matmul %0, %1, %cst {dimension_numbers = #tpu.dot_dimension_numbers<[1], [0], [0], [1], [0, 0, 1, 1], [], []>} : vector<8x80xf32>, vector<80x288xf32>, vector<8x288xf32> -> vector<8x288xf32>
    %3 = vector.extract_strided_slice %2 {offsets = [0, 0], sizes = [8, 64], strides = [1, 1]} : vector<8x288xf32> to vector<8x64xf32>
    %4 = vector.extract_strided_slice %2 {offsets = [0, 128], sizes = [8, 64], strides = [1, 1]} : vector<8x288xf32> to vector<8x64xf32>
    %5 = vector.extract_strided_slice %2 {offsets = [0, 256], sizes = [8, 32], strides = [1, 1]} : vector<8x288xf32> to vector<8x32xf32>
    %cst_3 = arith.constant dense<0.000000e+00> : vector<8x8xf32>
    %6 = tpu.matmul %3, %4, %cst_3 {dimension_numbers = #tpu.dot_dimension_numbers<[1], [1], [0], [0], [0, 0, 1, 0], [], []>} : vector<8x64xf32>, vector<8x64xf32>, vector<8x8xf32> -> vector<8x8xf32>
    %cst_4 = arith.constant dense<0xFF800000> : vector<8xf32>
    %7 = vector.multi_reduction <maximumf>, %6, %cst_4 [1] : vector<8x8xf32> to vector<8xf32>
    %8 = vector.shape_cast %7 : vector<8xf32> to vector<8x1xf32>
    %9 = vector.broadcast %8 : vector<8x1xf32> to vector<8x8xf32>
    %10 = arith.subf %6, %9 : vector<8x8xf32>
    %11 = math.exp %10 : vector<8x8xf32>
    %cst_5 = arith.constant dense<0.000000e+00> : vector<8xf32>
    %12 = vector.multi_reduction <add>, %11, %cst_5 [1] : vector<8x8xf32> to vector<8xf32>
    %13 = vector.shape_cast %12 : vector<8xf32> to vector<8x1xf32>
    %14 = tpu.reciprocal %13 : vector<8x1xf32> -> vector<8x1xf32>
    %15 = vector.broadcast %14 : vector<8x1xf32> to vector<8x8xf32>
    %16 = arith.mulf %11, %15 : vector<8x8xf32>
    %cst_6 = arith.constant dense<0.000000e+00> : vector<8x32xf32>
    %17 = tpu.matmul %16, %5, %cst_6 {dimension_numbers = #tpu.dot_dimension_numbers<[1], [0], [0], [1], [0, 0, 1, 1], [], []>} : vector<8x8xf32>, vector<8x32xf32>, vector<8x32xf32> -> vector<8x32xf32>
    %c0_7 = arith.constant 0 : index
    %c0_8 = arith.constant 0 : index
    %18 = vector.load %arg2[%c0_7, %c0_8] : memref<8x32xf32, #tpu.memory_space<vmem>>, vector<8x32xf32>
    tpu.vector_store %arg2[%c0_7, %c0_8], %17 {strides = array<i32>} : memref<8x32xf32, #tpu.memory_space<vmem>>, vector<8x32xf32>,
    return
  }
}

</mosaic_0001>

<bundles_post_ra>
// kernel: tpu_custom_call.1
= control target key start
LH: loop header
LB: loop body
LE: loop exit
PB: predicated region body
PF: predicated region fallthrough
CT: control target
= control target key end

     0   :  { %7 = vsyncpa [#allocation3], 0  ;;  %s360_s0 = inlined_call_operand.hbm [shape: f32[8,80], index: 0, kind: input, shape index: {}]   ;;  %s361_s1 = inlined_call_operand.hbm [shape: f32[80,288], index: 1, kind: input, shape index: {}]   ;;  %s362_s2 = inlined_call_operand.hbm [shape: f32[8,32], index: 2, kind: output, shape index: {}]  }
   0x1   :  { %8 = vsyncpa [#allocation6], 0 }
   0x2   :  { %9 = vsyncpa [#allocation4], 0  ;;  %s15_s11 = sshll.u32 %s360_s0, 4  ;;  %s325_s12 = smov [#allocation2]   ;;  %s16_s11 = int_to_ptr.hbm [resolvable:$true] %s15_s11 }
   0x3   :  { %s17_s13 = sshll.u32 %s325_s12, 4  ;;  %s25_s16 = sshll.u32 %s361_s1, 4  ;;  %s18_s13 = int_to_ptr.vmem [resolvable:$true] %s17_s13  ;;  %s26_s16 = int_to_ptr.hbm [resolvable:$true] %s25_s16 }
   0x4   :  { %20 = dma.hbm_to_vmem [thread:$0]  %s16_s11, 128, %s18_s13, [#allocation3]  }
   0x5   :  { %s326_s17 = smov [#allocation5]   ;;  %s327_s19 = smov 384  }
   0x6   :  { %s27_s18 = sshll.u32 %s326_s17, 4  ;;  %s328_s20 = smov 24   ;;  %s28_s18 = int_to_ptr.vmem [resolvable:$true] %s27_s18 }
   0x7   :  { %33 = dma.hbm_to_vmem [thread:$0]  %s26_s16, 3840, %s28_s18, [#allocation6], %s327_s19, %s327_s19, %s328_s20  }
   0x8   :  { %319 = dma.done.wait [#allocation3], 128  }
   0x9   :  { %320 = vsyncadd [#allocation3], 4294967168 }
   0xa   :  { %321 = dma.done.wait [#allocation6], 3840  }
   0xb   :  { %322 = vsyncadd [#allocation6], 4294963456  ;;  %v71_v0 = vld [vmem:[#allocation5 + $0xe0] sm:$0xff]  ;;  %v68_v1 = vld [vmem:[#allocation5 + $0xc8] sm:$0xff]  ;;  %vm73_vm0 = vcmask 654336   ;;  %vm137_vm1 = vcmask 523264  }
   0xc   :  { %v70_v2 = vld [vmem:[#allocation5 + $0xd8] sm:$0xff]  ;;  %103 = vmatpush.msra.mxu1 %v71_v0  ;;  %v67_v3 = vld [vmem:[#allocation5 + $0xc0] sm:$0xff]  ;;  %v65_v4 = vld [vmem:[#allocation5 + $0xb0] sm:$0xff]  ;;  %vm164_vm2 = vcmask 64512   ;;  %s329_s0 = smov [#allocation7]   ;;  %s221_s23 = sshll.u32 %s362_s2, 4  ;;  %s222_s23 = int_to_ptr.hbm [resolvable:$true] %s221_s23 }
   0xd   :  { %83 = vmatpush.msra.mxu0 %v70_v2  ;;  %v64_v5 = vld [vmem:[#allocation5 + $0xa8] sm:$0xff]  ;;  %v62_v6 = vld [vmem:[#allocation5 + $0x98] sm:$0xff]  ;;  %v61_v7 = vld [vmem:[#allocation5 + $0x90] sm:$0xff]  ;;  %s219_s1 = sshll.u32 %s329_s0, 4  ;;  %vm212_vm7 = vcmask 261120   ;;  %s220_s1 = int_to_ptr.vmem [resolvable:$true] %s219_s1 }
   0xe   :  { %104 = vmatpush.msra.mxu1 %v68_v1  ;;  %v59_v8 = vld [vmem:[#allocation5 + $0x80] sm:$0xff]  ;;  %v58_v9 = vld [vmem:[#allocation5 + $0x78] sm:$0xff]  ;;  %v56_v10 = vld [vmem:[#allocation5 + $0x68] sm:$0xff] }
   0xf   :  { %84 = vmatpush.msra.mxu0 %v67_v3  ;;  %v55_v11 = vld [vmem:[#allocation5 + $0x60] sm:$0xff]  ;;  %v53_v12 = vld [vmem:[#allocation5 + $0x50] sm:$0xff]  ;;  %v52_v13 = vld [vmem:[#allocation5 + $0x48] sm:$0xff] }
  0x10   :  { %105 = vmatpush.msra.mxu1 %v65_v4  ;;  %v50_v14 = vld [vmem:[#allocation5 + $0x38] sm:$0xff]  ;;  %v49_v15 = vld [vmem:[#allocation5 + $0x30] sm:$0xff]  ;;  %v47_v16 = vld [vmem:[#allocation5 + $0x20] sm:$0xff] }
  0x11   :  { %85 = vmatpush.msra.mxu0 %v64_v5  ;;  %v46_v17 = vld [vmem:[#allocation5 + $0x18] sm:$0xff]  ;;  %v44_v18 = vld [vmem:[#allocation5 + $0x8] sm:$0xff]  ;;  %v43_v19 = vld [vmem:[#allocation5] sm:$0xff] }
  0x12   :  { %106 = vmatpush.msra.mxu1 %v62_v6  ;;  %v42_v20 = vld [vmem:[#allocation2] sm:$0xff]  ;;  %v72_v23 = vld [vmem:[#allocation5 + $0xe8] sm:$0xff]  ;;  %v69_v24 = vld [vmem:[#allocation5 + $0xd0] sm:$0xff] }
  0x13   :  { %86 = vmatpush.msra.mxu0 %v61_v7  ;;  %123 = vmatpush.msra.mxu2 %v72_v23  ;;  %v66_v25 = vld [vmem:[#allocation5 + $0xb8] sm:$0xff]  ;;  %v63_v26 = vld [vmem:[#allocation5 + $0xa0] sm:$0xff]  ;;  %v60_v27 = vld [vmem:[#allocation5 + $0x88] sm:$0xff] }
  0x14   :  { %107 = vmatpush.msra.mxu1 %v59_v8  ;;  %v57_v28 = vld [vmem:[#allocation5 + $0x70] sm:$0xff]  ;;  %v54_v31 = vld [vmem:[#allocation5 + $0x58] sm:$0xff]  ;;  %v51_v32 = vld [vmem:[#allocation5 + $0x40] sm:$0xff] }
  0x15   :  { %87 = vmatpush.msra.mxu0 %v58_v9  ;;  %124 = vmatpush.msra.mxu2 %v69_v24  ;;  %v48_v33 = vld [vmem:[#allocation5 + $0x28] sm:$0xff]  ;;  %v45_v34 = vld [vmem:[#allocation5 + $0x10] sm:$0xff] }
  0x16   :  { %108 = vmatpush.msra.mxu1 %v56_v10 }
  0x17   :  { %88 = vmatpush.msra.mxu0 %v55_v11  ;;  %125 = vmatpush.msra.mxu2 %v66_v25 }
  0x18   :  { %109 = vmatpush.msra.mxu1 %v53_v12 }
  0x19   :  { %89 = vmatpush.msra.mxu0 %v52_v13  ;;  %126 = vmatpush.msra.mxu2 %v63_v26 }
  0x1a   :  { %110 = vmatpush.msra.mxu1 %v50_v14 }
  0x1b   :  { %90 = vmatpush.msra.mxu0 %v49_v15  ;;  %127 = vmatpush.msra.mxu2 %v60_v27 }
  0x1c   :  { %111 = vmatpush.msra.mxu1 %v47_v16 }
  0x1d   :  { %91 = vmatpush.msra.mxu0 %v46_v17  ;;  %128 = vmatpush.msra.mxu2 %v57_v28 }
  0x1e   :  { %112 = vmatpush.msra.mxu1 %v44_v18 }
  0x1f   :  { %92 = vmatpush.msra.mxu0 %v43_v19  ;;  %233 = vmatmul.msk.f32.vlgmr.msra.gmra.mxu1 %vm73_vm0, %v42_v20 }
  0x20   :  { %232 = vmatmul.msk.f32.vlgmr.msra.gmra.mxu0 %vm73_vm0, %v42_v20  ;;  %129 = vmatpush.msra.mxu2 %v54_v31 }
  0x22   :  { %130 = vmatpush.msra.mxu2 %v51_v32 }
  0x24   :  { %131 = vmatpush.msra.mxu2 %v48_v33 }
  0x26   :  { %132 = vmatpush.msra.mxu2 %v45_v34 }
  0x27   :  { %234 = vmatmul.msk.f32.vlgmr.msra.gmra.mxu2 %vm73_vm0, %v42_v20 }
  0x9c   :  { %v114_v21 = vpop.f32.mrf.mxu1 }
  0x9d   :  { %235 = vmatpush.xpose.msk.msra.mxu3 %vm137_vm1, %v114_v21  ;;  %v94_v22 = vpop.f32.mrf.mxu0 }
  0xa0   :  { %236 = vmatmul.msk.f32.vlgmr.msra.gmra.mxu3 %vm137_vm1, %v94_v22 }
  0xaa   :  { %v134_v40 = vpop.f32.mrf.mxu2 }
  0xab   :  { %207 = vmatpush.msrb.mxu3 %v134_v40 }
 0x123   :  { %v161_v29 = vpop.f32.mrf.mxu3 }
 0x124   :  { %v165_v30 = vsel %vm164_vm2, %v161_v29, -inf }
 0x125   :  { %166 = vmax.xlane.f32.xlu0 %v165_v30 }
 0x198   :  { %v167_v35 = vpop.xlane.xlu0 %166 }
 0x199   :  { %v168_v36 = vsub.f32 %v161_v29, %v167_v35 }
 0x19b   :  { %v169_v37 = vmul.f32 1.442695, %v168_v36 }
 0x19d   :  { %243 = vpow2.f32 %v169_v37 }
 0x1a3   :  { %v244_v38 = vpop.eup %243 }
 0x1a4   :  { %v171_v39 = vsel %vm164_vm2, %v244_v38, 0.0 }
 0x1a5   :  { %172 = vadd.xlane.f32.xlu0 %v171_v39 }
 0x218   :  { %v173_v41 = vpop.xlane.xlu0 %172 }
 0x219   :  { %245 = vrcp.f32 %v173_v41  ;;  %v185_v45 = vand.u32 2147483648, %v173_v41  ;;  %v183_v47 = vand.u32 2147483647, %v173_v41  ;;  %vm179_vm4 = vweird.f32 %v173_v41 }
 0x21b   :  { %v186_v49 = vor.u32 1.1754944e-38, %v185_v45  ;;  %vm184_vm6 = vcmp.eq.f32.partialorder %v183_v47, 8.507059e+37 }
 0x21f   :  { %v246_v42 = vpop.eup %245 }
 0x220   :  { %v175_v43 = vmul.f32 %v246_v42, %v173_v41  ;;  %vm180_vm3 = vweird.f32 %v246_v42 }
 0x221   :  { %vm181_vm5 = vmor %vm179_vm4, %vm180_vm3 }
 0x222   :  { %v176_v44 = vsub.f32 1.0, %v175_v43 }
 0x224   :  { %v177_v46 = vmul.f32 %v246_v42, %v176_v44 }
 0x226   :  { %v178_v48 = vadd.f32 %v246_v42, %v177_v46 }
 0x228   :  { %v182_v50 = vsel %vm181_vm5, %v246_v42, %v178_v48 }
 0x229   :  { %v187_v51 = vsel %vm184_vm6, %v186_v49, %v182_v50 }
 0x22a   :  { %v188_v52 = vmul.f32 %v244_v38, %v187_v51 }
 0x22c   :  { %237 = vmatmul.msk.f32.vlgmr.msrb.gmra.mxu3 %vm164_vm2, %v188_v52 }
 0x2af   :  { %v209_v53 = vpop.f32.mrf.mxu3 }
 0x2b0   :  { %213 = vst.msk [vmem:[#allocation7] sm:$0xff] %vm212_vm7, %v209_v53 }
 0x2b1   :  { %224 = dma.vmem_to_hbm [thread:$0]  %s220_s1, 128, %s222_s23, [#allocation4]  }
 0x2b2   :  { %323 = dma.done.wait [#allocation4], 128  }
 0x2b3   :  { %324 = vsyncadd [#allocation4], 4294967168 }
 0x2b4   :  { %229 = vsyncpa [#allocation3], 1 }
 0x2b5   :  { %230 = vsyncpa [#allocation6], 1 }
 0x2b6   :  { %231 = vsyncpa [#allocation4], 1 }

</bundles_post_ra>
